<compile_context>
chip_gen: v6e
topology: v6e:2x2x1
jax: 0.10.0
libtpu: 0.0.40
codegen_flags: <defaults>
</compile_context>

<pallas_src>
import numpy as np
import jax
import jax.numpy as jnp
from jax.experimental import pallas as pl
from jax.experimental.pallas import tpu as pltpu

_MIB = 1024 * 1024


def _vmem_limit(est_bytes):
    """Actual bytes + 25% headroom; floor = Mosaic internal-scratch slack at toy
    sizes, cap respects v7x's 64 MiB physical VMEM."""
    return int(min(48 * _MIB, max(4 * _MIB, est_bytes * 1.25)))


def _largest_divisor_leq(n, cap):
    d = max(1, min(n, cap))
    while n % d:
        d -= 1
    return d


# ----------------------------------------------------------------------------
# Pallas kernels
# ----------------------------------------------------------------------------
def _make_conv3x3_kernel(stride, cin, cout, ho, wo, flat):
    """3x3 / pad-1 / stride-s conv with fused im2col (no HBM patch matrix).

    x_ref  : flat  -> (1, s*s*cin, ho*wo)   bf16 phase-decomposed input
             !flat -> (1, s*s*cin, hq, wq)  bf16 phase-decomposed input
    w_ref  : (9, cout, cin)                 bf16  (resident constant)
    b_ref  : (cout, 1)                      f32   (resident constant)
    o_ref  : (1, cout, ho*wo)               f32
    o16_ref: (1, cout, ho*wo)               bf16  (same values, for bf16 consumers)
    """
    n = ho * wo

    def kernel(x_ref, w_ref, b_ref, o_ref, o16_ref):
        acc = jnp.zeros((cout, n), jnp.float32)
        for kh in range(3):
            for kw in range(3):
                ph, dh = kh % stride, kh // stride
                pw, dw = kw % stride, kw // stride
                rows = (ph * stride + pw) * cin
                if flat:
                    slab = x_ref[0, rows:rows + cin, :]               # (cin, n)
                else:
                    slab = x_ref[0, rows:rows + cin, dh:dh + ho, dw:dw + wo]
                    slab = slab.reshape(cin, n)
                acc = acc + jnp.dot(w_ref[kh * 3 + kw], slab,
                                    preferred_element_type=jnp.float32)
        y = jnp.maximum(acc + b_ref[...], 0.0)        # f32 epilogue (v5e-safe)
        o_ref[0] = y
        o16_ref[0] = y.astype(jnp.bfloat16)

    return kernel


def _preprocess_kernel(x_ref, kron_ref, pool_ref, o_ref):
    """Preprocessing.forward for one batch element (grid=(B,)).

    x_ref   : (1, C, H*W)      bf16 flattened layer feature
    kron_ref: (H*W, Ho*Wo)     bf16 Kron(rowInterp, colInterp).T   (resident)
    pool_ref: (Cout, C)        bf16 AdaptiveAvgPool1d as a matrix  (resident)
    o_ref   : (1, Cout, Ho*Wo) f32
    """
    y = jnp.dot(x_ref[0], kron_ref[...], preferred_element_type=jnp.float32)
    o = jnp.dot(pool_ref[...], y.astype(jnp.bfloat16),
                preferred_element_type=jnp.float32)
    o_ref[0] = o


def _make_near4_kernel(H, W):
    """near_4_process block: (H, W) stay on sublane/lane, dw shift via XLU roll."""
    Hp, Wp = H + 2, W + 2
    # (dh, dw) offsets for unfold(3, padding=1) indices [4, 1, 5, 7, 3]
    offsets = ((1, 1), (0, 1), (1, 2), (2, 1), (1, 0))

    def kernel(x_ref, o_ref):
        # x_ref: (1, cblk, H+2, W+2)   zero-padded feature block
        # o_ref: (1, 5, cblk, H, W)
        x = x_ref[0]                                          # (cblk, Hp, Wp)
        rolled = {0: x}
        for _, dw in offsets:                                 # hoist distinct rolls
            if dw and dw not in rolled:
                rolled[dw] = pltpu.roll(x, (Wp - dw) % Wp, axis=2)
        for k, (dh, dw) in enumerate(offsets):
            # dh: sublane slice; dw: already handled by the lane roll.
            o_ref[0, k] = rolled[dw][:, dh:dh + H, :W]

    return kernel


# ----------------------------------------------------------------------------
# Host-side helper matrices (built once, cached by the model)
# ----------------------------------------------------------------------------
def _bilinear_matrix(out_size, in_size):
    """PyTorch F.interpolate(mode='bilinear', align_corners=False) as matrix."""
    m = np.zeros((out_size, in_size), np.float32)
    scale = in_size / out_size
    for o in range(out_size):
        src = (o + 0.5) * scale - 0.5
        if src < 0.0:
            src = 0.0
        i0 = min(int(np.floor(src)), in_size - 1)
        i1 = min(i0 + 1, in_size - 1)
        l1 = src - i0
        m[o, i0] += 1.0 - l1
        m[o, i1] += l1
    return m


def _adaptive_pool_matrix(l_in, l_out):
    """PyTorch nn.AdaptiveAvgPool1d(l_out) as an (l_in, l_out) matrix."""
    m = np.zeros((l_in, l_out), np.float32)
    for i in range(l_out):
        s = (i * l_in) // l_out
        e = -((-(i + 1) * l_in) // l_out)  # ceil((i+1)*l_in / l_out)
        m[s:e, i] = 1.0 / (e - s)
    return m


# ----------------------------------------------------------------------------
# Wrappers
# ----------------------------------------------------------------------------
def conv3x3_relu(x, w, b, stride):
    """3x3 conv, padding=1, stride `stride`, + ReLU.

    Returns (f32 NCHW output, bf16 (B, Cout, Ho*Wo) copy for bf16 consumers).
    The im2col patch matrix is never materialized in HBM: the host only does a
    space-to-depth relayout of the padded input (~1x bytes) so that all 9 taps
    become contiguous, non-strided slices inside the kernel.
    """
    B, Cin, H, W = x.shape
    Cout = w.shape[0]
    Ho = (H + 2 - 3) // stride + 1
    Wo = (W + 2 - 3) // stride + 1
    N = Ho * Wo

    # phase decomposition (space-to-depth) of the zero-padded input
    need_h = stride * (Ho - 1) + 3
    need_w = stride * (Wo - 1) + 3
    Hq = -(-need_h // stride)
    Wq = -(-need_w // stride)
    Hs, Ws = Hq * stride, Wq * stride
    xpad = jnp.pad(x, ((0, 0), (0, 0),
                       (1, 1 + max(0, Hs - (H + 2))),
                       (1, 1 + max(0, Ws - (W + 2)))))[:, :, :Hs, :Ws]
    xph = xpad.reshape(B, Cin, Hq, stride, Wq, stride)
    xph = xph.transpose(0, 3, 5, 1, 2, 4).reshape(B, stride * stride * Cin, Hq, Wq)
    xph = xph.astype(jnp.bfloat16)

    # kernel==3 and stride>=3  =>  every tap has (dh, dw) == (0, 0): the host can
    # pre-flatten spatial so the kernel needs zero in-kernel reshapes.
    flat = stride >= 3
    if flat:
        xph = xph.reshape(B, stride * stride * Cin, N)
        x_block = (1, stride * stride * Cin, N)
        x_index = lambda bi: (bi, 0, 0)
        xblk_bytes = stride * stride * Cin * N * 2
    else:
        x_block = (1, stride * stride * Cin, Hq, Wq)
        x_index = lambda bi: (bi, 0, 0, 0)
        xblk_bytes = stride * stride * Cin * Hq * Wq * 2

    wtaps = w.transpose(2, 3, 0, 1).reshape(9, Cout, Cin).astype(jnp.bfloat16)
    bcol = b.reshape(Cout, 1).astype(jnp.float32)

    # VMEM: double-buffered x / out blocks + resident weights/bias + live values
    est = (2 * xblk_bytes + 2 * Cout * N * 4 + 2 * Cout * N * 2
           + 9 * Cout * Cin * 2 + Cout * 4 + Cin * N * 2 + Cout * N * 4)

    out32, out16 = pl.pallas_call(
        _make_conv3x3_kernel(stride, Cin, Cout, Ho, Wo, flat),
        out_shape=(jax.ShapeDtypeStruct((B, Cout, N), jnp.float32),
                   jax.ShapeDtypeStruct((B, Cout, N), jnp.bfloat16)),
        grid=(B,),
        in_specs=[
            pl.BlockSpec(x_block, x_index),
            pl.BlockSpec((9, Cout, Cin), lambda bi: (0, 0, 0)),   # resident
            pl.BlockSpec((Cout, 1), lambda bi: (0, 0)),           # resident
        ],
        out_specs=(pl.BlockSpec((1, Cout, N), lambda bi: (bi, 0, 0)),
                   pl.BlockSpec((1, Cout, N), lambda bi: (bi, 0, 0))),
        compiler_params=pltpu.CompilerParams(
            dimension_semantics=("parallel",),
            vmem_limit_bytes=_vmem_limit(est)),
    )(xph, wtaps, bcol)

    return out32.reshape(B, Cout, Ho, Wo), out16


def near_4_process(feature, layout="torch"):
    """Puzzle_net.near_4_process: unfold(3, pad=1), pick [4, 1, 5, 7, 3].

    layout="torch"      -> (B*H*W, C, 5)  (PyTorch-identical; one XLA permute)
    layout="lane_dense" -> (B, 5, C, H*W) (kernel-native lane-dense layout;
                            logically the same tensor with the (B*HW, C, 5)
                            axes permuted — preferred for on-TPU consumers)
    """
    B, C, H, W = feature.shape
    xpad = jnp.pad(feature, ((0, 0), (0, 0), (1, 1), (1, 1)))
    cblk = _largest_divisor_leq(C, 128)
    itm = np.dtype(feature.dtype).itemsize
    est = 2 * (cblk * (H + 2) * (W + 2) * itm) + 2 * (5 * cblk * H * W * itm)

    out = pl.pallas_call(
        _make_near4_kernel(H, W),
        out_shape=jax.ShapeDtypeStruct((B, 5, C, H, W), feature.dtype),
        grid=(B, C // cblk),
        in_specs=[pl.BlockSpec((1, cblk, H + 2, W + 2),
                               lambda b, ci: (b, ci, 0, 0))],
        out_specs=pl.BlockSpec((1, 5, cblk, H, W),
                               lambda b, ci: (b, 0, ci, 0, 0)),
        compiler_params=pltpu.CompilerParams(
            dimension_semantics=("parallel", "parallel"),
            vmem_limit_bytes=_vmem_limit(est)),
    )(xpad)

    if layout == "lane_dense":
        return out.reshape(B, 5, C, H * W)          # free reshape, no relayout
    # PyTorch return layout requires the (.., C, 5) physical layout; a single
    # XLA permute is unavoidable in that case.
    return out.transpose(0, 3, 4, 2, 1).reshape(B * H * W, C, 5)


# ----------------------------------------------------------------------------
# Puzzle_net (synthetic deterministic backbone + hooks semantics)
# ----------------------------------------------------------------------------
class PuzzleNetPallas:
    LAYER_NAMES = ("layer2", "layer3")

    def __init__(self, image_size, key, c_layer2=8, c_layer3=16):
        self.image_size = image_size
        k1, k2, k3, k4 = jax.random.split(key, 4)
        # synthetic backbone weights (deterministic)
        self.w2 = jax.random.normal(k1, (c_layer2, 3, 3, 3), jnp.float32) * 0.2
        self.b2 = jax.random.normal(k2, (c_layer2,), jnp.float32) * 0.02
        self.w3 = jax.random.normal(k3, (c_layer3, c_layer2, 3, 3), jnp.float32) * 0.2
        self.b3 = jax.random.normal(k4, (c_layer3,), jnp.float32) * 0.02

        # bf16 flat copies of the hooked features produced by the conv kernels
        # (mirrors the hook-dict statefulness of the PyTorch module)
        self._bf16_flat = {}

        # analogue of get_feature_shape(): probe with a dummy batch of 1
        dummy = jnp.ones((1, 3, *image_size), jnp.float32)
        probe = self.feature_extraction_process(dummy)
        self.layer_output_shape = {k: v.shape[1:] for k, v in probe.items()}
        # Pre_processes: outputs_dim = channels of last layer,
        #                output_img_size = spatial size of first layer
        self.outputs_dim = self.layer_output_shape[self.LAYER_NAMES[-1]][0]
        self.output_img_size = self.layer_output_shape[self.LAYER_NAMES[0]][1:]

        # --- cached Preprocessing matrices (per layer) ------------------------
        # bf16 device copies feed the MXU; f32 numpy originals kept for checks.
        Ho, Wo = self.output_img_size
        self._kron_np, self._poolT_np = {}, {}
        self._kron, self._poolT = {}, {}
        for name in self.LAYER_NAMES:
            C, H, W = self.layer_output_shape[name]
            row = _bilinear_matrix(Ho, H)                      # (Ho, H)
            col = _bilinear_matrix(Wo, W)                      # (Wo, W)
            kron = np.kron(row, col).T.astype(np.float32)      # (H*W, Ho*Wo)
            poolT = _adaptive_pool_matrix(C, self.outputs_dim).T.astype(np.float32)
            self._kron_np[name], self._poolT_np[name] = kron, poolT
            self._kron[name] = jnp.asarray(kron, dtype=jnp.bfloat16)
            self._poolT[name] = jnp.asarray(poolT, dtype=jnp.bfloat16)

    # backbone + forward hooks -> dict of intermediate features
    def feature_extraction_process(self, images):
        f2, f2_16 = conv3x3_relu(images, self.w2, self.b2, stride=4)   # 'layer2'
        # the layer3 conv consumes the bf16 copy directly: the f32 layer2
        # feature is not re-read / re-cast on this path.
        B, C2 = f2.shape[0], f2.shape[1]
        f3, f3_16 = conv3x3_relu(f2_16.reshape(B, C2, *f2.shape[2:]),
                                 self.w3, self.b3, stride=2)           # 'layer3'
        self._bf16_flat = {"layer2": f2_16, "layer3": f3_16}
        return {"layer2": f2, "layer3": f3}

    # Puzzle_net.forward: run backbone, return hooked outputs
    def forward(self, images):
        return self.feature_extraction_process(images)

    # Preprocessing module (interp -> flatten -> transpose -> avgpool -> reshape)
    def preprocessing_forward(self, name, feature, flat_bf16=None):
        B, C, H, W = feature.shape
        Ho, Wo = self.output_img_size
        Cout = self.outputs_dim
        if flat_bf16 is None or flat_bf16.shape != (B, C, H * W):
            flat_bf16 = feature.reshape(B, C, H * W).astype(jnp.bfloat16)
        kron = self._kron[name]                               # (H*W, Ho*Wo) bf16
        pool = self._poolT[name]                              # (Cout, C)    bf16
        est = (2 * C * H * W * 2 + kron.size * 2 + pool.size * 2
               + 2 * Cout * Ho * Wo * 4 + C * Ho * Wo * 4)
        out = pl.pallas_call(
            _preprocess_kernel,
            out_shape=jax.ShapeDtypeStruct((B, Cout, Ho * Wo), jnp.float32),
            grid=(B,),
            in_specs=[
                pl.BlockSpec((1, C, H * W), lambda b: (b, 0, 0)),
                pl.BlockSpec((H * W, Ho * Wo), lambda b: (0, 0)),   # resident
                pl.BlockSpec((Cout, C), lambda b: (0, 0)),          # resident
            ],
            out_specs=pl.BlockSpec((1, Cout, Ho * Wo), lambda b: (b, 0, 0)),
            compiler_params=pltpu.CompilerParams(
                dimension_semantics=("parallel",),
                vmem_limit_bytes=_vmem_limit(est)),
        )(flat_bf16, kron, pool)
        return out.reshape(B, Cout, Ho, Wo)

    # the feature path used in fit(): Pre_processes per layer + channel concat
    def preprocess_concat(self, outputs):
        feats = [self.preprocessing_forward(k, outputs[k], self._bf16_flat.get(k))
                 for k in self.LAYER_NAMES]
        return jnp.concatenate(feats, axis=1)

    def near_4_process_fn(self, feature, layout="torch"):
        return near_4_process(feature, layout=layout)


# ----------------------------------------------------------------------------
if __name__ == "__main__":
    key = jax.random.PRNGKey(0)
    image_size = (32, 32)

    net = PuzzleNetPallas(image_size=image_size, key=key)

    img_key = jax.random.fold_in(key, 123)
    images = jax.random.normal(img_key, (2, 3, *image_size), jnp.float32)

    # forward(): dict of hooked layer features (layer2, layer3)
    outputs = net.forward(images)
    # fit() feature path: Preprocessing per layer + channel concat
    feats = net.preprocess_concat(outputs)
    # near_4_process on layer2 features (PyTorch layout)
    n4 = net.near_4_process_fn(outputs["layer2"])

    jax.block_until_ready((outputs["layer2"], outputs["layer3"], feats, n4))

    assert outputs["layer2"].shape == (2, 8, 8, 8)
    assert outputs["layer3"].shape == (2, 16, 4, 4)
    assert feats.shape == (2, 32, 8, 8)
    assert n4.shape == (2 * 8 * 8, 8, 5)

    # ---- numerical checks vs pure-JAX references ----------------------------
    def conv_ref(x, w, b, s):
        y = jax.lax.conv_general_dilated(
            x, w, (s, s), ((1, 1), (1, 1)),
            dimension_numbers=("NCHW", "OIHW", "NCHW"))
        return jax.nn.relu(y + b[None, :, None, None])

    ref2 = conv_ref(images, net.w2, net.b2, 4)
    ref3 = conv_ref(ref2, net.w3, net.b3, 2)
    np.testing.assert_allclose(np.asarray(outputs["layer2"]), np.asarray(ref2),
                               rtol=0.05, atol=0.05)
    np.testing.assert_allclose(np.asarray(outputs["layer3"]), np.asarray(ref3),
                               rtol=0.1, atol=0.2)

    def near4_ref(f):
        B, C, H, W = f.shape
        xp = jnp.pad(f, ((0, 0), (0, 0), (1, 1), (1, 1)))
        taps = ((1, 1), (0, 1), (1, 2), (2, 1), (1, 0))
        g = jnp.stack([xp[:, :, dh:dh + H, dw:dw + W] for dh, dw in taps], axis=2)
        return g.reshape(B, C, 5, H * W).transpose(0, 3, 1, 2).reshape(B * H * W, C, 5)

    np.testing.assert_allclose(np.asarray(n4),
                               np.asarray(near4_ref(outputs["layer2"])),
                               rtol=0.0, atol=1e-6)

    def preprocess_ref(name, f):
        B, C, H, W = f.shape
        Ho, Wo = net.output_img_size
        y = f.reshape(B, C, H * W).astype(jnp.float32) @ jnp.asarray(net._kron_np[name])
        o = jnp.einsum("oc,bcp->bop", jnp.asarray(net._poolT_np[name]), y)
        return o.reshape(B, net.outputs_dim, Ho, Wo)

    feats_ref = jnp.concatenate(
        [preprocess_ref(k, outputs[k]) for k in net.LAYER_NAMES], axis=1)
    np.testing.assert_allclose(np.asarray(feats), np.asarray(feats_ref),
                               rtol=0.1, atol=0.1)

    print("KERNEL_OK")
</pallas_src>

<mosaic_0001>
module attributes {stable_mosaic.version = 11 : i64} {
  func.func @kernel(%arg0: i32, %arg1: memref<1x48x64xbf16, #tpu.memory_space<vmem>>, %arg2: memref<9x8x3xbf16, #tpu.memory_space<vmem>>, %arg3: memref<8x1xf32, #tpu.memory_space<vmem>>, %arg4: memref<1x8x64xf32, #tpu.memory_space<vmem>>, %arg5: memref<1x8x64xbf16, #tpu.memory_space<vmem>>) attributes {dimension_semantics = [#tpu.dimension_semantics<parallel>], iteration_bounds = array<i64: 1>, scalar_prefetch = 0 : i64, scratch_operands = 0 : i64, tpu.core_type = #tpu.core_type<tc>, window_params = [{transform_indices = @transform_0, window_bounds = array<i64: 1, 48, 64>}, {pipeline_mode = #tpu.pipeline_mode<synchronous>, transform_indices = @transform_1, window_bounds = array<i64: 9, 8, 3>}, {pipeline_mode = #tpu.pipeline_mode<synchronous>, transform_indices = @transform_2, window_bounds = array<i64: 8, 1>}, {transform_indices = @transform_3, window_bounds = array<i64: 1, 8, 64>}, {transform_indices = @transform_4, window_bounds = array<i64: 1, 8, 64>}]} {
    %cst = arith.constant 0.000000e+00 : f32
    %0 = vector.broadcast %cst : f32 to vector<8x64xf32>
    %c0 = arith.constant 0 : index
    %c0_0 = arith.constant 0 : index
    %c0_1 = arith.constant 0 : index
    %1 = vector.load %arg1[%c0, %c0_0, %c0_1] : memref<1x48x64xbf16, #tpu.memory_space<vmem>>, vector<1x3x64xbf16>
    %2 = vector.shape_cast %1 : vector<1x3x64xbf16> to vector<3x64xbf16>
    %c0_2 = arith.constant 0 : index
    %c0_3 = arith.constant 0 : index
    %c0_4 = arith.constant 0 : index
    %3 = vector.load %arg2[%c0_2, %c0_3, %c0_4] : memref<9x8x3xbf16, #tpu.memory_space<vmem>>, vector<1x8x3xbf16>
    %4 = vector.shape_cast %3 : vector<1x8x3xbf16> to vector<8x3xbf16>
    %cst_5 = arith.constant dense<0.000000e+00> : vector<8x64xf32>
    %5 = tpu.matmul %4, %2, %cst_5 {dimension_numbers = #tpu.dot_dimension_numbers<[1], [0], [0], [1], [0, 0, 1, 1], [], []>} : vector<8x3xbf16>, vector<3x64xbf16>, vector<8x64xf32> -> vector<8x64xf32>
    %6 = arith.addf %0, %5 : vector<8x64xf32>
    %c0_6 = arith.constant 0 : index
    %c3 = arith.constant 3 : index
    %c0_7 = arith.constant 0 : index
    %7 = vector.load %arg1[%c0_6, %c3, %c0_7] : memref<1x48x64xbf16, #tpu.memory_space<vmem>>, vector<1x3x64xbf16>
    %8 = vector.shape_cast %7 : vector<1x3x64xbf16> to vector<3x64xbf16>
    %c1 = arith.constant 1 : index
    %c0_8 = arith.constant 0 : index
    %c0_9 = arith.constant 0 : index
    %9 = vector.load %arg2[%c1, %c0_8, %c0_9] : memref<9x8x3xbf16, #tpu.memory_space<vmem>>, vector<1x8x3xbf16>
    %10 = vector.shape_cast %9 : vector<1x8x3xbf16> to vector<8x3xbf16>
    %cst_10 = arith.constant dense<0.000000e+00> : vector<8x64xf32>
    %11 = tpu.matmul %10, %8, %cst_10 {dimension_numbers = #tpu.dot_dimension_numbers<[1], [0], [0], [1], [0, 0, 1, 1], [], []>} : vector<8x3xbf16>, vector<3x64xbf16>, vector<8x64xf32> -> vector<8x64xf32>
    %12 = arith.addf %6, %11 : vector<8x64xf32>
    %c0_11 = arith.constant 0 : index
    %c6 = arith.constant 6 : index
    %c0_12 = arith.constant 0 : index
    %13 = vector.load %arg1[%c0_11, %c6, %c0_12] : memref<1x48x64xbf16, #tpu.memory_space<vmem>>, vector<1x3x64xbf16>
    %14 = vector.shape_cast %13 : vector<1x3x64xbf16> to vector<3x64xbf16>
    %c2 = arith.constant 2 : index
    %c0_13 = arith.constant 0 : index
    %c0_14 = arith.constant 0 : index
    %15 = vector.load %arg2[%c2, %c0_13, %c0_14] : memref<9x8x3xbf16, #tpu.memory_space<vmem>>, vector<1x8x3xbf16>
    %16 = vector.shape_cast %15 : vector<1x8x3xbf16> to vector<8x3xbf16>
    %cst_15 = arith.constant dense<0.000000e+00> : vector<8x64xf32>
    %17 = tpu.matmul %16, %14, %cst_15 {dimension_numbers = #tpu.dot_dimension_numbers<[1], [0], [0], [1], [0, 0, 1, 1], [], []>} : vector<8x3xbf16>, vector<3x64xbf16>, vector<8x64xf32> -> vector<8x64xf32>
    %18 = arith.addf %12, %17 : vector<8x64xf32>
    %c0_16 = arith.constant 0 : index
    %c12 = arith.constant 12 : index
    %c0_17 = arith.constant 0 : index
    %19 = vector.load %arg1[%c0_16, %c12, %c0_17] : memref<1x48x64xbf16, #tpu.memory_space<vmem>>, vector<1x3x64xbf16>
    %20 = vector.shape_cast %19 : vector<1x3x64xbf16> to vector<3x64xbf16>
    %c3_18 = arith.constant 3 : index
    %c0_19 = arith.constant 0 : index
    %c0_20 = arith.constant 0 : index
    %21 = vector.load %arg2[%c3_18, %c0_19, %c0_20] : memref<9x8x3xbf16, #tpu.memory_space<vmem>>, vector<1x8x3xbf16>
    %22 = vector.shape_cast %21 : vector<1x8x3xbf16> to vector<8x3xbf16>
    %cst_21 = arith.constant dense<0.000000e+00> : vector<8x64xf32>
    %23 = tpu.matmul %22, %20, %cst_21 {dimension_numbers = #tpu.dot_dimension_numbers<[1], [0], [0], [1], [0, 0, 1, 1], [], []>} : vector<8x3xbf16>, vector<3x64xbf16>, vector<8x64xf32> -> vector<8x64xf32>
    %24 = arith.addf %18, %23 : vector<8x64xf32>
    %c0_22 = arith.constant 0 : index
    %c15 = arith.constant 15 : index
    %c0_23 = arith.constant 0 : index
    %25 = vector.load %arg1[%c0_22, %c15, %c0_23] : memref<1x48x64xbf16, #tpu.memory_space<vmem>>, vector<1x3x64xbf16>
    %26 = vector.shape_cast %25 : vector<1x3x64xbf16> to vector<3x64xbf16>
    %c4 = arith.constant 4 : index
    %c0_24 = arith.constant 0 : index
    %c0_25 = arith.constant 0 : index
    %27 = vector.load %arg2[%c4, %c0_24, %c0_25] : memref<9x8x3xbf16, #tpu.memory_space<vmem>>, vector<1x8x3xbf16>
    %28 = vector.shape_cast %27 : vector<1x8x3xbf16> to vector<8x3xbf16>
    %cst_26 = arith.constant dense<0.000000e+00> : vector<8x64xf32>
    %29 = tpu.matmul %28, %26, %cst_26 {dimension_numbers = #tpu.dot_dimension_numbers<[1], [0], [0], [1], [0, 0, 1, 1], [], []>} : vector<8x3xbf16>, vector<3x64xbf16>, vector<8x64xf32> -> vector<8x64xf32>
    %30 = arith.addf %24, %29 : vector<8x64xf32>
    %c0_27 = arith.constant 0 : index
    %c18 = arith.constant 18 : index
    %c0_28 = arith.constant 0 : index
    %31 = vector.load %arg1[%c0_27, %c18, %c0_28] : memref<1x48x64xbf16, #tpu.memory_space<vmem>>, vector<1x3x64xbf16>
    %32 = vector.shape_cast %31 : vector<1x3x64xbf16> to vector<3x64xbf16>
    %c5 = arith.constant 5 : index
    %c0_29 = arith.constant 0 : index
    %c0_30 = arith.constant 0 : index
    %33 = vector.load %arg2[%c5, %c0_29, %c0_30] : memref<9x8x3xbf16, #tpu.memory_space<vmem>>, vector<1x8x3xbf16>
    %34 = vector.shape_cast %33 : vector<1x8x3xbf16> to vector<8x3xbf16>
    %cst_31 = arith.constant dense<0.000000e+00> : vector<8x64xf32>
    %35 = tpu.matmul %34, %32, %cst_31 {dimension_numbers = #tpu.dot_dimension_numbers<[1], [0], [0], [1], [0, 0, 1, 1], [], []>} : vector<8x3xbf16>, vector<3x64xbf16>, vector<8x64xf32> -> vector<8x64xf32>
    %36 = arith.addf %30, %35 : vector<8x64xf32>
    %c0_32 = arith.constant 0 : index
    %c24 = arith.constant 24 : index
    %c0_33 = arith.constant 0 : index
    %37 = vector.load %arg1[%c0_32, %c24, %c0_33] : memref<1x48x64xbf16, #tpu.memory_space<vmem>>, vector<1x3x64xbf16>
    %38 = vector.shape_cast %37 : vector<1x3x64xbf16> to vector<3x64xbf16>
    %c6_34 = arith.constant 6 : index
    %c0_35 = arith.constant 0 : index
    %c0_36 = arith.constant 0 : index
    %39 = vector.load %arg2[%c6_34, %c0_35, %c0_36] : memref<9x8x3xbf16, #tpu.memory_space<vmem>>, vector<1x8x3xbf16>
    %40 = vector.shape_cast %39 : vector<1x8x3xbf16> to vector<8x3xbf16>
    %cst_37 = arith.constant dense<0.000000e+00> : vector<8x64xf32>
    %41 = tpu.matmul %40, %38, %cst_37 {dimension_numbers = #tpu.dot_dimension_numbers<[1], [0], [0], [1], [0, 0, 1, 1], [], []>} : vector<8x3xbf16>, vector<3x64xbf16>, vector<8x64xf32> -> vector<8x64xf32>
    %42 = arith.addf %36, %41 : vector<8x64xf32>
    %c0_38 = arith.constant 0 : index
    %c27 = arith.constant 27 : index
    %c0_39 = arith.constant 0 : index
    %43 = vector.load %arg1[%c0_38, %c27, %c0_39] : memref<1x48x64xbf16, #tpu.memory_space<vmem>>, vector<1x3x64xbf16>
    %44 = vector.shape_cast %43 : vector<1x3x64xbf16> to vector<3x64xbf16>
    %c7 = arith.constant 7 : index
    %c0_40 = arith.constant 0 : index
    %c0_41 = arith.constant 0 : index
    %45 = vector.load %arg2[%c7, %c0_40, %c0_41] : memref<9x8x3xbf16, #tpu.memory_space<vmem>>, vector<1x8x3xbf16>
    %46 = vector.shape_cast %45 : vector<1x8x3xbf16> to vector<8x3xbf16>
    %cst_42 = arith.constant dense<0.000000e+00> : vector<8x64xf32>
    %47 = tpu.matmul %46, %44, %cst_42 {dimension_numbers = #tpu.dot_dimension_numbers<[1], [0], [0], [1], [0, 0, 1, 1], [], []>} : vector<8x3xbf16>, vector<3x64xbf16>, vector<8x64xf32> -> vector<8x64xf32>
    %48 = arith.addf %42, %47 : vector<8x64xf32>
    %c0_43 = arith.constant 0 : index
    %c30 = arith.constant 30 : index
    %c0_44 = arith.constant 0 : index
    %49 = vector.load %arg1[%c0_43, %c30, %c0_44] : memref<1x48x64xbf16, #tpu.memory_space<vmem>>, vector<1x3x64xbf16>
    %50 = vector.shape_cast %49 : vector<1x3x64xbf16> to vector<3x64xbf16>
    %c8 = arith.constant 8 : index
    %c0_45 = arith.constant 0 : index
    %c0_46 = arith.constant 0 : index
    %51 = vector.load %arg2[%c8, %c0_45, %c0_46] : memref<9x8x3xbf16, #tpu.memory_space<vmem>>, vector<1x8x3xbf16>
    %52 = vector.shape_cast %51 : vector<1x8x3xbf16> to vector<8x3xbf16>
    %cst_47 = arith.constant dense<0.000000e+00> : vector<8x64xf32>
    %53 = tpu.matmul %52, %50, %cst_47 {dimension_numbers = #tpu.dot_dimension_numbers<[1], [0], [0], [1], [0, 0, 1, 1], [], []>} : vector<8x3xbf16>, vector<3x64xbf16>, vector<8x64xf32> -> vector<8x64xf32>
    %54 = arith.addf %48, %53 : vector<8x64xf32>
    %c0_48 = arith.constant 0 : index
    %c0_49 = arith.constant 0 : index
    %55 = vector.load %arg3[%c0_48, %c0_49] : memref<8x1xf32, #tpu.memory_space<vmem>>, vector<8x1xf32>
    %56 = vector.broadcast %55 : vector<8x1xf32> to vector<8x64xf32>
    %57 = arith.addf %54, %56 : vector<8x64xf32>
    %cst_50 = arith.constant 0.000000e+00 : f32
    %58 = vector.broadcast %cst_50 : f32 to vector<8x64xf32>
    %59 = arith.maximumf %57, %58 : vector<8x64xf32>
    %c0_51 = arith.constant 0 : index
    %c0_52 = arith.constant 0 : index
    %c0_53 = arith.constant 0 : index
    %60 = vector.load %arg4[%c0_51, %c0_52, %c0_53] : memref<1x8x64xf32, #tpu.memory_space<vmem>>, vector<1x8x64xf32>
    %61 = vector.shape_cast %60 : vector<1x8x64xf32> to vector<8x64xf32>
    %62 = vector.shape_cast %59 : vector<8x64xf32> to vector<1x8x64xf32>
    tpu.vector_store %arg4[%c0_51, %c0_52, %c0_53], %62 {strides = array<i32>} : memref<1x8x64xf32, #tpu.memory_space<vmem>>, vector<1x8x64xf32>,
    %63 = arith.truncf %59 : vector<8x64xf32> to vector<8x64xbf16>
    %c0_54 = arith.constant 0 : index
    %c0_55 = arith.constant 0 : index
    %c0_56 = arith.constant 0 : index
    %64 = vector.load %arg5[%c0_54, %c0_55, %c0_56] : memref<1x8x64xbf16, #tpu.memory_space<vmem>>, vector<1x8x64xbf16>
    %65 = vector.shape_cast %64 : vector<1x8x64xbf16> to vector<8x64xbf16>
    %66 = vector.shape_cast %63 : vector<8x64xbf16> to vector<1x8x64xbf16>
    tpu.vector_store %arg5[%c0_54, %c0_55, %c0_56], %66 {strides = array<i32>} : memref<1x8x64xbf16, #tpu.memory_space<vmem>>, vector<1x8x64xbf16>,
    return
  }
  func.func @transform_0(%arg0: i32) -> (i32, i32, i32) {
    %c0_i32 = arith.constant 0 : i32
    %c0_i32_0 = arith.constant 0 : i32
    %c0_i32_1 = arith.constant 0 : i32
    return %arg0, %c0_i32, %c0_i32_0 : i32, i32, i32
  }
  func.func @transform_1(%arg0: i32) -> (i32, i32, i32) {
    %c0_i32 = arith.constant 0 : i32
    %c0_i32_0 = arith.constant 0 : i32
    %c0_i32_1 = arith.constant 0 : i32
    %c0_i32_2 = arith.constant 0 : i32
    return %c0_i32, %c0_i32_0, %c0_i32_1 : i32, i32, i32
  }
  func.func @transform_2(%arg0: i32) -> (i32, i32) {
    %c0_i32 = arith.constant 0 : i32
    %c0_i32_0 = arith.constant 0 : i32
    %c0_i32_1 = arith.constant 0 : i32
    return %c0_i32, %c0_i32_0 : i32, i32
  }
  func.func @transform_3(%arg0: i32) -> (i32, i32, i32) {
    %c0_i32 = arith.constant 0 : i32
    %c0_i32_0 = arith.constant 0 : i32
    %c0_i32_1 = arith.constant 0 : i32
    return %arg0, %c0_i32, %c0_i32_0 : i32, i32, i32
  }
  func.func @transform_4(%arg0: i32) -> (i32, i32, i32) {
    %c0_i32 = arith.constant 0 : i32
    %c0_i32_0 = arith.constant 0 : i32
    %c0_i32_1 = arith.constant 0 : i32
    return %arg0, %c0_i32, %c0_i32_0 : i32, i32, i32
  }
}

</mosaic_0001>

<bundles_post_ra>
// kernel: tpu_custom_call.1
= control target key start
LH: loop header
LB: loop body
LE: loop exit
PB: predicated region body
PF: predicated region fallthrough
CT: control target
= control target key end

     0   :  { %10 = vsyncpa [#allocation3], 0  ;;  %v724_v1 = vmov 0.0   ;;  %vm39_vm0 = vcmask 1040384   ;;  %vm40_vm1 = vcmask 1041408   ;;  %v725_v5 = vmov 65535   ;;  %s865_s0 = inlined_call_operand.vmem [shape: bf16[1,48,64], index: 0, kind: input, shape index: {}]   ;;  %s866_s1 = inlined_call_operand.vmem [shape: bf16[9,8,3], index: 1, kind: input, shape index: {}]   ;;  %s867_s2 = inlined_call_operand.vmem [shape: f32[8,1], index: 2, kind: input, shape index: {}]   ;;  %s868_s3 = inlined_call_operand.hbm [shape: f32[1,8,64], index: 3, kind: output, shape index: {0}]   ;;  %s869_s4 = inlined_call_operand.hbm [shape: bf16[1,8,64], index: 4, kind: output, shape index: {1}]  }
   0x1   :  { %v673_v0 = vld [vmem:[%s865_s0] ss:$0 sps:$4 sm:$0x66]   ;;  %612 = vmatprep.subr.bf16.mxu0 %v724_v1  ;;  %618 = vmatprep.subr.bf16.mxu1 %v724_v1  ;;  %v41_v6 = vsel %vm39_vm0, 4294967295, %v725_v5  ;;  %vm726_vm2 = vmmov 0   ;;  %v727_v12 = vmov 0  }
   0x2   :  { %v19_v2 = vld [vmem:[%s865_s0] sm:$0x3]  ;;  %v28_v3 = vshrl.u32 %v673_v0, 16  ;;  %v31_v4 = vshll.u32 %v673_v0, 16  ;;  %614 = vmatprep.mubr.msk.bf16.mxu0 %vm726_vm2, %v724_v1  ;;  %620 = vmatprep.mubr.msk.bf16.mxu1 %vm726_vm2, %v724_v1  ;;  %v767_v7 = vsel %vm40_vm1, %v41_v6, 0  ;;  %vm35_vm3 = vcmask 23552  }
   0x3   :  { %v90_v10 = vand.u32 %v767_v7, %v19_v2  ;;  %v674_v11 = vld [vmem:[%s865_s0] sm:$0x18]   ;;  %672 = vset.pattern.permute.xlu0 %v727_v12  ;;  %v676_v20 = vld [vmem:[%s865_s0 + $0x4] sm:$0x18]   ;;  %v577_v33 = vld [vmem:[%s866_s1 + $0xc] sm:$0xf] }
   0x4   :  { %v30_v8 = vrot.slane %v28_v3, 1  ;;  %v33_v9 = vrot.slane %v31_v4, 2  ;;  %v675_v13 = vld [vmem:[%s865_s0 + $0x4] ss:$0 sps:$4 sm:$0xcc]   ;;  %v141_v17 = vrot.slane %v674_v11, 3 }
   0x5   :  { %v529_v14 = vld [vmem:[%s867_s2] sm:$0xff]  ;;  %619 = vmatpush3.bf16.msra.mxu1 %v90_v10  ;;  %v195_v18 = vrot.slane %v675_v13, 2  ;;  %v677_v22 = vld [vmem:[%s865_s0 + $0x8] ss:$0 sps:$4 sm:$0x66]   ;;  %v253_v25 = vshrl.u32 %v676_v20, 16 }
   0x6   :  { %v34_v15 = vor.u32 %v33_v9, %v30_v8  ;;  %v20_v16 = vld [vmem:[%s866_s1] sm:$0xf]  ;;  %532 = vperm.xlu0 %672, %v529_v14   ;;  %630 = vmatprep.subr.bf16.mxu1 %v724_v1  ;;  %v570_v23 = vld [vmem:[%s866_s1 + $0x4] sm:$0xf]  ;;  %v146_v24 = vand.u32 %v141_v17, %v767_v7  ;;  %v256_v26 = vshll.u32 %v676_v20, 16  ;;  %v313_v27 = vrot.slane %v677_v22, 1 }
   0x7   :  { %v200_v21 = vand.u32 %v195_v18, %v767_v7  ;;  %v678_v28 = vld [vmem:[%s865_s0 + $0xc] ss:$0 sps:$4 sm:$0x66]   ;;  %v255_v29 = vrot.slane %v253_v25, 3 }
   0x8   :  { %v44_v19 = vand.u32 %v767_v7, %v34_v15  ;;  %621 = vmatmul.mubr.msk.bf16.vlgmr.msra.gmra.mxu1 %vm35_vm3, %v20_v16  ;;  %v258_v30 = vrot.slane %v256_v26, 4  ;;  %v418_v31 = vshrl.u32 %v678_v28, 16  ;;  %v421_v32 = vshll.u32 %v678_v28, 16 }
   0x9   :  { %632 = vmatprep.mubr.msk.bf16.mxu1 %vm726_vm2, %v724_v1  ;;  %631 = vmatpush3.bf16.msra.mxu1 %v200_v21  ;;  %v318_v35 = vand.u32 %v313_v27, %v767_v7 }
   0xa   :  { %613 = vmatpush3.bf16.msra.mxu0 %v44_v19  ;;  %642 = vmatprep.subr.bf16.mxu1 %v724_v1  ;;  %v259_v34 = vor.u32 %v258_v30, %v255_v29 }
   0xb   :  { %624 = vmatprep.subr.bf16.mxu0 %v724_v1 }
   0xd   :  { %615 = vmatmul.mubr.msk.bf16.vlgmr.msra.gmra.mxu0 %vm35_vm3, %v570_v23 }
   0xe   :  { %625 = vmatpush3.bf16.msra.mxu0 %v146_v24  ;;  %626 = vmatprep.mubr.msk.bf16.mxu0 %vm726_vm2, %v724_v1 }
   0xf   :  { %11 = vsyncpa [#allocation5], 0  ;;  %636 = vmatprep.subr.bf16.mxu0 %v724_v1  ;;  %v420_v36 = vrot.slane %v418_v31, 1  ;;  %v423_v37 = vrot.slane %v421_v32, 2  ;;  %v574_v38 = vld [vmem:[%s866_s1 + $0x8] sm:$0xf]  ;;  %v264_v39 = vand.u32 %v259_v34, %v767_v7 }
  0x10   :  { %633 = vmatmul.mubr.msk.bf16.vlgmr.msra.gmra.mxu1 %vm35_vm3, %v577_v33  ;;  %v583_v41 = vld [vmem:[%s866_s1 + $0x14] sm:$0xf]  ;;  %v361_v43 = vld [vmem:[%s865_s0 + $0xc] sm:$0x3]  ;;  %v580_v44 = vld [vmem:[%s866_s1 + $0x10] sm:$0xf] }
  0x11   :  { %643 = vmatpush3.bf16.msra.mxu1 %v318_v35  ;;  %644 = vmatprep.mubr.msk.bf16.mxu1 %vm726_vm2, %v724_v1  ;;  %v424_v40 = vor.u32 %v423_v37, %v420_v36  ;;  %v368_v45 = vand.u32 %v361_v43, %v767_v7  ;;  %v679_v46 = vld [vmem:[%s865_s0 + $0xc] sm:$0x18]   ;;  %v588_v47 = vld [vmem:[%s866_s1 + $0x1c] sm:$0xf]  ;;  %v586_v49 = vld [vmem:[%s866_s1 + $0x18] sm:$0xf] }
  0x12   :  { %654 = vmatprep.subr.bf16.mxu1 %v724_v1  ;;  %v481_v48 = vrot.slane %v679_v46, 3  ;;  %v591_v51 = vld [vmem:[%s866_s1 + $0x20] sm:$0xf]  ;;  %s728_s1 = smov [#allocation2]   ;;  %vm537_vm4 = vcmask 523264   ;;  %s729_s26 = smov [#allocation4]  }
  0x13   :  { %v429_v42 = vand.u32 %v424_v40, %v767_v7  ;;  %s548_s25 = sshll.u32 %s728_s1, 4  ;;  %s558_s27 = sshll.u32 %s729_s26, 4  ;;  %vm540_vm5 = vcmask 519168   ;;  %s549_s25 = int_to_ptr.vmem [resolvable:$true] %s548_s25  ;;  %s559_s27 = int_to_ptr.vmem [resolvable:$true] %s558_s27 }
  0x14   :  { %v486_v50 = vand.u32 %v481_v48, %v767_v7  ;;  %s680_s28 = scalar_lea.vmem %s549_s25, 128  ;;  %p685_p1 = scmp.lt.s32.totalorder %s549_s25, %s549_s25 }
  0x15   :  { %627 = vmatmul.mubr.msk.bf16.vlgmr.msra.gmra.mxu0 %vm35_vm3, %v574_v38  ;;  %p681_p0 = scmp.ne.s32.totalorder %s549_s25, %s680_s28  ;;  %p686_p2 = scmp.lt.s32.totalorder %s680_s28, %s680_s28 }
  0x16   :  { %637 = vmatpush3.bf16.msra.mxu0 %v264_v39  ;;  %638 = vmatprep.mubr.msk.bf16.mxu0 %vm726_vm2, %v724_v1 }
  0x17   :  { %648 = vmatprep.subr.bf16.mxu0 %v724_v1  ;;  %p687_p3 = por %p686_p2, %p685_p1 }
  0x18   :  { %645 = vmatmul.mubr.msk.bf16.vlgmr.msra.gmra.mxu1 %vm35_vm3, %v583_v41 }
  0x19   :  { %655 = vmatpush3.bf16.msra.mxu1 %v429_v42  ;;  %656 = vmatprep.mubr.msk.bf16.mxu1 %vm726_vm2, %v724_v1  ;;  %p688_p4 = pnand %p687_p3, %p681_p0 }
  0x1d   :  { %639 = vmatmul.mubr.msk.bf16.vlgmr.msra.gmra.mxu0 %vm35_vm3, %v580_v44 }
  0x1e   :  { %649 = vmatpush3.bf16.msra.mxu0 %v368_v45  ;;  %650 = vmatprep.mubr.msk.bf16.mxu0 %vm726_vm2, %v724_v1 }
  0x1f   :  { %660 = vmatprep.subr.bf16.mxu0 %v724_v1 }
  0x20   :  { %657 = vmatmul.mubr.msk.bf16.vlgmr.msra.gmra.mxu1 %vm35_vm3, %v588_v47 }
  0x25   :  { %651 = vmatmul.mubr.msk.bf16.vlgmr.msra.gmra.mxu0 %vm35_vm3, %v586_v49 }
  0x26   :  { %661 = vmatpush3.bf16.msra.mxu0 %v486_v50  ;;  %662 = vmatprep.mubr.msk.bf16.mxu0 %vm726_vm2, %v724_v1 }
  0x2d   :  { %663 = vmatmul.mubr.msk.bf16.vlgmr.msra.gmra.mxu0 %vm35_vm3, %v591_v51 }
  0x81   :  { %v533_v28 = vpop.permute.xlu0 %532 }
  0xc8   :  { %v126_v52 = vpop.f32.mrf.mxu1 }
  0xca   :  { %v622_v53 = vpop.f32.mrf.mxu1 }
  0xcc   :  { %v129_v55 = vpop.f32.mrf.mxu1 }
  0xcd   :  { %v80_v54 = vpop.f32.mrf.mxu0 }
  0xce   :  { %v623_v57 = vpop.f32.mrf.mxu1  ;;  %v127_v4 = vadd.f32 %v126_v52, %v80_v54 }
  0xcf   :  { %v616_v56 = vpop.f32.mrf.mxu0 }
  0xd0   :  { %v236_v59 = vpop.f32.mrf.mxu1 }
  0xd1   :  { %v83_v58 = vpop.f32.mrf.mxu0 }
  0xd2   :  { %v634_v61 = vpop.f32.mrf.mxu1 }
  0xd3   :  { %v617_v60 = vpop.f32.mrf.mxu0 }
  0xd4   :  { %v239_v63 = vpop.f32.mrf.mxu1 }
  0xd5   :  { %v182_v62 = vpop.f32.mrf.mxu0 }
  0xd6   :  { %v635_v1 = vpop.f32.mrf.mxu1  ;;  %v188_v7 = vadd.f32 %v182_v62, %v127_v4 }
  0xd7   :  { %v628_v0 = vpop.f32.mrf.mxu0 }
  0xd8   :  { %v354_v3 = vpop.f32.mrf.mxu1  ;;  %v242_v12 = vadd.f32 %v236_v59, %v188_v7 }
  0xd9   :  { %v185_v2 = vpop.f32.mrf.mxu0 }
  0xda   :  { %v646_v6 = vpop.f32.mrf.mxu1 }
  0xdb   :  { %v629_v5 = vpop.f32.mrf.mxu0 }
  0xdc   :  { %v357_v9 = vpop.f32.mrf.mxu1 }
  0xdd   :  { %v300_v8 = vpop.f32.mrf.mxu0 }
  0xde   :  { %v647_v11 = vpop.f32.mrf.mxu1  ;;  %v306_v15 = vadd.f32 %v300_v8, %v242_v12 }
  0xdf   :  { %v640_v10 = vpop.f32.mrf.mxu0 }
  0xe0   :  { %v465_v14 = vpop.f32.mrf.mxu1  ;;  %v360_v20 = vadd.f32 %v354_v3, %v306_v15 }
  0xe1   :  { %v303_v13 = vpop.f32.mrf.mxu0 }
  0xe2   :  { %v658_v17 = vpop.f32.mrf.mxu1 }
  0xe3   :  { %v641_v16 = vpop.f32.mrf.mxu0 }
  0xe4   :  { %v468_v19 = vpop.f32.mrf.mxu1 }
  0xe5   :  { %v404_v18 = vpop.f32.mrf.mxu0 }
  0xe6   :  { %v659_v22 = vpop.f32.mrf.mxu1  ;;  %v410_v23 = vadd.f32 %v404_v18, %v360_v20 }
  0xe7   :  { %v652_v21 = vpop.f32.mrf.mxu0 }
  0xe8   :  { %v471_v26 = vadd.f32 %v465_v14, %v410_v23 }
  0xe9   :  { %v407_v24 = vpop.f32.mrf.mxu0 }
  0xeb   :  { %v653_v25 = vpop.f32.mrf.mxu0 }
  0xed   :  { %v522_v27 = vpop.f32.mrf.mxu0 }
  0xee   :  { %v528_v29 = vadd.f32 %v522_v27, %v471_v26 }
  0xef   :  { %v664_v30 = vpop.f32.mrf.mxu0 }
  0xf0   :  { %v535_v31 = vadd.f32 %v533_v28, %v528_v29 }
  0xf1   :  { %v525_v32 = vpop.f32.mrf.mxu0 }
  0xf2   :  { %v536_v33 = vmax.f32 %v535_v31, 0.0 }
  0xf3   :  { %v665_v34 = vpop.f32.mrf.mxu0 }
  0xf4   :  { %v539_v35 = vpack.c.bf16 %v536_v33, %v536_v33  ;;  %538 = vst.msk [vmem:[#allocation2] sm:$0xff] %vm537_vm4, %v536_v33 }
  0xf5   :  { %691 = shalt.err (!%p688_p4)
}
  0xf6   :  { %551 = dma.vmem_to_hbm [thread:$0]  %s549_s25, 128, %s868_s3, [#allocation3]   ;;  %541 = vst.msk [vmem:[#allocation4] sm:$0xf] %vm540_vm5, %v539_v35 }
  0xf7   :  { %s700_s30 = scalar_lea.vmem %s559_s27, 64  ;;  %p705_p6 = scmp.lt.s32.totalorder %s559_s27, %s559_s27 }
  0xf8   :  { %p701_p5 = scmp.ne.s32.totalorder %s559_s27, %s700_s30  ;;  %p706_p7 = scmp.lt.s32.totalorder %s700_s30, %s700_s30 }
  0xfa   :  { %p707_p8 = por %p706_p7, %p705_p6 }
  0xfc   :  { %p708_p9 = pnand %p707_p8, %p701_p5 }
  0xfe   :  { %711 = shalt.err (!%p708_p9)
}
  0xff   :  { %561 = dma.vmem_to_hbm [thread:$0]  %s559_s27, 64, %s869_s4, [#allocation5]  }
 0x100   :  { %720 = dma.done.wait [#allocation3], 128  }
 0x101   :  { %721 = vsyncadd [#allocation3], 4294967168 }
 0x102   :  { %722 = dma.done.wait [#allocation5], 64  }
 0x103   :  { %723 = vsyncadd [#allocation5], 4294967232 }
 0x104   :  { %568 = vsyncpa [#allocation3], 1 }
 0x105   :  { %569 = vsyncpa [#allocation5], 1 }

</bundles_post_ra>
